<compile_context>
chip_gen: v7x
topology: tpu7x:2x2x1
jax: 0.10.0
libtpu: 0.0.40
codegen_flags: <defaults>
</compile_context>

<pallas_src>
import jax
import jax.numpy as jnp
from jax.experimental import pallas as pl
from jax.experimental.pallas import tpu as pltpu


def _deconv_bn_relu_kernel(x_ref, w_ref, shift_ref, o_ref):
    # x_ref: [1, Ci, TS] (compute dtype), w_ref: [4*Co, Ci] (BN scale folded in),
    # shift_ref: [4*Co, 1] f32, o_ref: [1, 4*Co, TS] (output dtype).
    x = x_ref[0]                      # [Ci, TS]
    w = w_ref[...]                    # [Ncols, Ci]
    ci = w.shape[1]
    if ci <= 8:
        # Tiny contraction: VPU broadcast-FMA (outer-product accumulate), f32 accumulate.
        xf = x.astype(jnp.float32)
        wf = w.astype(jnp.float32)
        acc = wf[:, 0:1] * xf[0:1, :]
        for c in range(1, ci):
            acc = acc + wf[:, c:c + 1] * xf[c:c + 1, :]
    else:
        acc = jnp.dot(w, x, preferred_element_type=jnp.float32)      # MXU
    y = acc + shift_ref[...]                                         # fused BN shift
    o_ref[0] = jnp.maximum(y, 0.0).astype(o_ref.dtype)               # fused ReLU


def _pick_spatial_tile(hw, ci, ncols, in_bytes, out_bytes,
                       budget_bytes=8 * 1024 * 1024):
    """Largest 128-multiple lane tile whose double-buffered in+out blocks fit the budget."""
    per_lane = 2 * (ci * in_bytes + ncols * out_bytes)     # double-buffered x + out block
    max_lanes = max(128, int(budget_bytes // per_lane) // 128 * 128)
    if hw <= max_lanes:
        return hw, hw                                      # whole image in one block
    hw_pad = -(-hw // 128) * 128
    ts = 128
    for cand in range(int(max_lanes), 127, -128):
        if hw_pad % cand == 0:
            ts = cand
            break
    return ts, hw_pad


def trans_basic_conv2d(x_nchw, weight, gamma, beta, running_mean, running_var,
                       eps=1e-5, compute_dtype=jnp.bfloat16):
    """Forward of TransBasicConv2d (BatchNorm in inference/eval mode)."""
    N, Ci, H, W = x_nchw.shape
    Ci_w, Co, KH, KW = weight.shape       # ConvTranspose2d weight: [Cin, Cout, kH, kW]
    assert Ci == Ci_w and KH == 2 and KW == 2
    HW = H * W
    Ncols = Co * KH * KW
    out_dtype = x_nchw.dtype

    # ---- fold BatchNorm (running stats) into weight scale + per-row shift --------------
    inv_std = jax.lax.rsqrt(running_var.astype(jnp.float32) + eps)
    scale_co = gamma.astype(jnp.float32) * inv_std                          # [Co]
    shift_co = beta.astype(jnp.float32) - running_mean.astype(jnp.float32) * scale_co
    # rows ordered (co, kh, kw): row = co*4 + kh*2 + kw
    w_rows = jnp.transpose(weight, (1, 2, 3, 0)).reshape(Ncols, Ci)         # [(co,kh,kw), Ci]
    w_scaled = (w_rows.astype(jnp.float32)
                * jnp.repeat(scale_co, KH * KW)[:, None]).astype(compute_dtype)
    shift_rows = jnp.repeat(shift_co, KH * KW).reshape(Ncols, 1)            # f32

    # ---- input stays NCHW: [N,Ci,H,W] -> [N,Ci,H*W] is a free reshape ------------------
    x3 = x_nchw.reshape(N, Ci, HW)
    if x3.dtype != compute_dtype:
        # (in a real pipeline the producer should emit bf16 directly; this is a cheap cast)
        x3 = x3.astype(compute_dtype)

    in_bytes = jnp.dtype(compute_dtype).itemsize
    out_bytes = jnp.dtype(out_dtype).itemsize
    ts, hw_pad = _pick_spatial_tile(HW, Ci, Ncols, in_bytes, out_bytes)
    if hw_pad != HW:
        x3 = jnp.pad(x3, ((0, 0), (0, 0), (0, hw_pad - HW)))
    n_s = hw_pad // ts

    out_t = pl.pallas_call(
        _deconv_bn_relu_kernel,
        out_shape=jax.ShapeDtypeStruct((N, Ncols, hw_pad), out_dtype),
        grid_spec=pltpu.PrefetchScalarGridSpec(
            num_scalar_prefetch=0,
            grid=(N, n_s),
            in_specs=[
                pl.BlockSpec((1, Ci, ts), lambda n, s: (n, 0, s)),
                pl.BlockSpec((Ncols, Ci), lambda n, s: (0, 0)),
                pl.BlockSpec((Ncols, 1), lambda n, s: (0, 0)),
            ],
            out_specs=pl.BlockSpec((1, Ncols, ts), lambda n, s: (n, 0, s)),
        ),
        compiler_params=pltpu.CompilerParams(
            dimension_semantics=("parallel", "parallel"),
            vmem_limit_bytes=32 * 1024 * 1024),
    )(x3, w_scaled, shift_rows)

    if hw_pad != HW:
        out_t = out_t[:, :, :HW]

    # ---- 2x2 tap -> spatial interleave back to NCHW (single XLA transpose) -------------
    out = out_t.reshape(N, Co, KH, KW, H, W)
    out = jnp.transpose(out, (0, 1, 4, 2, 5, 3)).reshape(N, Co, H * KH, W * KW)
    return out


def _reference_f32(x, weight, gamma, beta, running_mean, running_var, eps=1e-5):
    # Pure-f32 JAX reference of the module forward pass.
    N, Ci, H, W = x.shape
    _, Co, KH, KW = weight.shape
    t = jnp.einsum('nchw,cokl->nohkwl', x, weight)            # [N,Co,H,KH,W,KW]
    y = t.reshape(N, Co, H * KH, W * KW)
    inv_std = 1.0 / jnp.sqrt(running_var + eps)
    y = (y - running_mean[None, :, None, None]) * (gamma * inv_std)[None, :, None, None] \
        + beta[None, :, None, None]
    return jnp.maximum(y, 0.0)


def _reference_like_kernel(x, weight, gamma, beta, running_mean, running_var,
                           eps=1e-5, compute_dtype=jnp.bfloat16):
    # Reference using the same bf16-cast operands as the kernel (tight comparison).
    N, Ci, H, W = x.shape
    _, Co, KH, KW = weight.shape
    inv_std = jax.lax.rsqrt(running_var.astype(jnp.float32) + eps)
    scale_co = gamma.astype(jnp.float32) * inv_std
    shift_co = beta.astype(jnp.float32) - running_mean.astype(jnp.float32) * scale_co
    w_rows = jnp.transpose(weight, (1, 2, 3, 0)).reshape(Co * KH * KW, Ci)
    w_eff = (w_rows * jnp.repeat(scale_co, KH * KW)[:, None]
             ).astype(compute_dtype).astype(jnp.float32)
    x_eff = x.reshape(N, Ci, H * W).astype(compute_dtype).astype(jnp.float32)
    t = jnp.einsum('kc,nch->nkh', w_eff, x_eff) \
        + jnp.repeat(shift_co, KH * KW)[None, :, None]
    t = jnp.maximum(t, 0.0)
    out = t.reshape(N, Co, KH, KW, H, W)
    return jnp.transpose(out, (0, 1, 4, 2, 5, 3)).reshape(
        N, Co, H * KH, W * KW).astype(x.dtype)


if __name__ == "__main__":
    in_planes, out_planes = 4, 8
    N, H, W = 2, 16, 16

    key = jax.random.PRNGKey(0)
    k_x, k_w, k_g, k_b, k_m, k_v = jax.random.split(key, 6)

    x = jax.random.normal(k_x, (N, in_planes, H, W), dtype=jnp.float32)
    # ConvTranspose2d weight: [in_planes, out_planes, 2, 2]
    weight = jax.random.normal(k_w, (in_planes, out_planes, 2, 2),
                               dtype=jnp.float32) * 0.1
    # BatchNorm2d params / running stats (deterministic, synthetic).
    gamma = 1.0 + 0.1 * jax.random.normal(k_g, (out_planes,), dtype=jnp.float32)
    beta = 0.1 * jax.random.normal(k_b, (out_planes,), dtype=jnp.float32)
    running_mean = 0.1 * jax.random.normal(k_m, (out_planes,), dtype=jnp.float32)
    running_var = jnp.abs(jax.random.normal(k_v, (out_planes,),
                                            dtype=jnp.float32)) + 0.5
    # TODO(synk): BatchNorm is implemented in eval mode (running statistics); training-mode
    # batch statistics would require an additional batch-reduction pass.

    out = trans_basic_conv2d(x, weight, gamma, beta, running_mean, running_var)
    out = jax.block_until_ready(out)
    assert out.shape == (N, out_planes, 2 * H, 2 * W), out.shape

    ref_tight = _reference_like_kernel(x, weight, gamma, beta, running_mean, running_var)
    ref_f32 = _reference_f32(x, weight, gamma, beta, running_mean, running_var)
    err_tight = float(jnp.max(jnp.abs(out - ref_tight)))
    err_f32 = float(jnp.max(jnp.abs(out - ref_f32)))
    assert err_tight < 1e-4, err_tight   # kernel matches its bf16-compute reference
    assert err_f32 < 1e-1, err_f32       # and the pure-f32 module semantics (bf16 tolerance)

    print("KERNEL_OK")
</pallas_src>

<mosaic_0001>
module attributes {stable_mosaic.version = 11 : i64} {
  func.func @_deconv_bn_relu_kernel(%arg0: i32, %arg1: i32, %arg2: memref<1x4x256xbf16, #tpu.memory_space<vmem>>, %arg3: memref<32x4xbf16, #tpu.memory_space<vmem>>, %arg4: memref<32x1xf32, #tpu.memory_space<vmem>>, %arg5: memref<1x32x256xf32, #tpu.memory_space<vmem>>) attributes {dimension_semantics = [#tpu.dimension_semantics<parallel>, #tpu.dimension_semantics<parallel>], iteration_bounds = array<i64: 2, 1>, scalar_prefetch = 0 : i64, scratch_operands = 0 : i64, tpu.core_type = #tpu.core_type<tc>, window_params = [{transform_indices = @transform_0, window_bounds = array<i64: 1, 4, 256>}, {pipeline_mode = #tpu.pipeline_mode<synchronous>, transform_indices = @transform_1, window_bounds = array<i64: 32, 4>}, {pipeline_mode = #tpu.pipeline_mode<synchronous>, transform_indices = @transform_2, window_bounds = array<i64: 32, 1>}, {transform_indices = @transform_3, window_bounds = array<i64: 1, 32, 256>}]} {
    %c0 = arith.constant 0 : index
    %c0_0 = arith.constant 0 : index
    %c0_1 = arith.constant 0 : index
    %0 = vector.load %arg2[%c0, %c0_0, %c0_1] : memref<1x4x256xbf16, #tpu.memory_space<vmem>>, vector<1x4x256xbf16>
    %1 = vector.shape_cast %0 : vector<1x4x256xbf16> to vector<4x256xbf16>
    %c0_2 = arith.constant 0 : index
    %c0_3 = arith.constant 0 : index
    %2 = vector.load %arg3[%c0_2, %c0_3] : memref<32x4xbf16, #tpu.memory_space<vmem>>, vector<32x4xbf16>
    %3 = arith.extf %1 : vector<4x256xbf16> to vector<4x256xf32>
    %4 = arith.extf %2 : vector<32x4xbf16> to vector<32x4xf32>
    %5 = vector.extract_strided_slice %4 {offsets = [0, 0], sizes = [32, 1], strides = [1, 1]} : vector<32x4xf32> to vector<32x1xf32>
    %6 = vector.extract_strided_slice %3 {offsets = [0, 0], sizes = [1, 256], strides = [1, 1]} : vector<4x256xf32> to vector<1x256xf32>
    %7 = vector.broadcast %5 : vector<32x1xf32> to vector<32x256xf32>
    %8 = vector.broadcast %6 : vector<1x256xf32> to vector<32x256xf32>
    %9 = arith.mulf %7, %8 : vector<32x256xf32>
    %10 = vector.extract_strided_slice %4 {offsets = [0, 1], sizes = [32, 1], strides = [1, 1]} : vector<32x4xf32> to vector<32x1xf32>
    %11 = vector.extract_strided_slice %3 {offsets = [1, 0], sizes = [1, 256], strides = [1, 1]} : vector<4x256xf32> to vector<1x256xf32>
    %12 = vector.broadcast %10 : vector<32x1xf32> to vector<32x256xf32>
    %13 = vector.broadcast %11 : vector<1x256xf32> to vector<32x256xf32>
    %14 = arith.mulf %12, %13 : vector<32x256xf32>
    %15 = arith.addf %9, %14 : vector<32x256xf32>
    %16 = vector.extract_strided_slice %4 {offsets = [0, 2], sizes = [32, 1], strides = [1, 1]} : vector<32x4xf32> to vector<32x1xf32>
    %17 = vector.extract_strided_slice %3 {offsets = [2, 0], sizes = [1, 256], strides = [1, 1]} : vector<4x256xf32> to vector<1x256xf32>
    %18 = vector.broadcast %16 : vector<32x1xf32> to vector<32x256xf32>
    %19 = vector.broadcast %17 : vector<1x256xf32> to vector<32x256xf32>
    %20 = arith.mulf %18, %19 : vector<32x256xf32>
    %21 = arith.addf %15, %20 : vector<32x256xf32>
    %22 = vector.extract_strided_slice %4 {offsets = [0, 3], sizes = [32, 1], strides = [1, 1]} : vector<32x4xf32> to vector<32x1xf32>
    %23 = vector.extract_strided_slice %3 {offsets = [3, 0], sizes = [1, 256], strides = [1, 1]} : vector<4x256xf32> to vector<1x256xf32>
    %24 = vector.broadcast %22 : vector<32x1xf32> to vector<32x256xf32>
    %25 = vector.broadcast %23 : vector<1x256xf32> to vector<32x256xf32>
    %26 = arith.mulf %24, %25 : vector<32x256xf32>
    %27 = arith.addf %21, %26 : vector<32x256xf32>
    %c0_4 = arith.constant 0 : index
    %c0_5 = arith.constant 0 : index
    %28 = vector.load %arg4[%c0_4, %c0_5] : memref<32x1xf32, #tpu.memory_space<vmem>>, vector<32x1xf32>
    %29 = vector.broadcast %28 : vector<32x1xf32> to vector<32x256xf32>
    %30 = arith.addf %27, %29 : vector<32x256xf32>
    %cst = arith.constant 0.000000e+00 : f32
    %31 = vector.broadcast %cst : f32 to vector<32x256xf32>
    %32 = arith.maximumf %30, %31 : vector<32x256xf32>
    %c0_6 = arith.constant 0 : index
    %c0_7 = arith.constant 0 : index
    %c0_8 = arith.constant 0 : index
    %33 = vector.load %arg5[%c0_6, %c0_7, %c0_8] : memref<1x32x256xf32, #tpu.memory_space<vmem>>, vector<1x32x256xf32>
    %34 = vector.shape_cast %33 : vector<1x32x256xf32> to vector<32x256xf32>
    %35 = vector.shape_cast %32 : vector<32x256xf32> to vector<1x32x256xf32>
    tpu.vector_store %arg5[%c0_6, %c0_7, %c0_8], %35 {strides = array<i32>} : memref<1x32x256xf32, #tpu.memory_space<vmem>>, vector<1x32x256xf32>,
    return
  }
  func.func @transform_0(%arg0: i32, %arg1: i32) -> (i32, i32, i32) {
    %c0_i32 = arith.constant 0 : i32
    %c0_i32_0 = arith.constant 0 : i32
    return %arg0, %c0_i32, %arg1 : i32, i32, i32
  }
  func.func @transform_1(%arg0: i32, %arg1: i32) -> (i32, i32) {
    %c0_i32 = arith.constant 0 : i32
    %c0_i32_0 = arith.constant 0 : i32
    %c0_i32_1 = arith.constant 0 : i32
    return %c0_i32, %c0_i32_0 : i32, i32
  }
  func.func @transform_2(%arg0: i32, %arg1: i32) -> (i32, i32) {
    %c0_i32 = arith.constant 0 : i32
    %c0_i32_0 = arith.constant 0 : i32
    %c0_i32_1 = arith.constant 0 : i32
    return %c0_i32, %c0_i32_0 : i32, i32
  }
  func.func @transform_3(%arg0: i32, %arg1: i32) -> (i32, i32, i32) {
    %c0_i32 = arith.constant 0 : i32
    %c0_i32_0 = arith.constant 0 : i32
    return %arg0, %c0_i32, %arg1 : i32, i32, i32
  }
}

</mosaic_0001>

<bundles_post_ra>
// kernel: tpu_custom_call.1
= control target key start
LH: loop header
LB: loop body
LE: loop exit
PB: predicated region body
PF: predicated region fallthrough
CT: control target
= control target key end

     0   :  { %8 = vsyncpa [#allocation3], 0  ;;  %s939_s0 = inlined_call_operand.vmem [shape: bf16[2,4,256], index: 0, kind: input, shape index: {}]   ;;  %s940_s1 = inlined_call_operand.vmem [shape: bf16[32,4], index: 1, kind: input, shape index: {}]   ;;  %s941_s2 = inlined_call_operand.vmem [shape: f32[32,1], index: 2, kind: input, shape index: {}]   ;;  %s942_s3 = inlined_call_operand.hbm [shape: f32[2,32,256], index: 3, kind: output, shape index: {}]  }
   0x1   :  { %10 = vsyncpa [#allocation3 + $0x1], 0  ;;  %s790_s12 = smov 0   ;;  %s792_s13 = smov 0  }
   0x2   :  { %s794_s14 = smov 0   ;;  %s796_s15 = smov 0  }
   0x3   :  { %s798_s16 = smov 0   ;;  %s800_s17 = smov 0  }
   0x4 LB: > { %s550_s18 = sadd.s32 4294967295, %s761_s17   ;;  %s551_s19 = sadd.s32 4294967294, %s761_s17   ;;  %s761_s17 = sphi %s800_s17, %s16_s17   ;;  %s757_s16 = sphi %s798_s16, %s949_s16   ;;  %s753_s15 = sphi %s796_s15, %s948_s15   ;;  %s749_s14 = sphi %s794_s14, %s947_s14   ;;  %s745_s13 = sphi %s792_s13, %s946_s13   ;;  %s741_s12 = sphi %s790_s12, %s945_s12  }
   0x5   : > { %s28_s20 = sadd.s32 1, %s757_s16  ;;  %s107_s21 = sadd.s32 1, %s749_s14 }
   0x6   : > { %p30_p0 = scmp.ge.s32.totalorder %s28_s20, 2  ;;  %p117_p1 = scmp.ne.s32.totalorder %s749_s14, %s745_s13 }
   0x7   : > { %p118_p2 = scmp.eq.s32.totalorder %s550_s18, 1  ;;  %p123_p3 = scmp.ne.s32.totalorder %s745_s13, %s741_s12 }
   0x8   : > { %s951_s20 = smov (%p30_p0, %s28_s20), 0  ;;  %p124_p5 = scmp.eq.s32.totalorder %s551_s19, 1 }
   0x9   : > { %p830_p4 = por %p118_p2, %p117_p1  ;;  %s102_s23 = ssub.s32 %s757_s16, %s951_s20 }
   0xa   : > { %p554_p6 = scmp.ge.s32.totalorder %s761_s17, 1  ;;  %p105_p7 = scmp.eq.s32.totalorder %s102_s23, 0 }
   0xb   : > { %p837_p8 = por %p124_p5, %p123_p3  ;;  %p161_p9 = scmp.lt.s32.totalorder %s761_s17, 3 }
   0xc   : > { %s843_s25 = scalar_select %p105_p7, %s749_s14, %s107_s21  }
   0xd   : > { %p162_p10 = pnand %p554_p6, %p161_p9 }
   0xe   : > { %v566_v0 = vld [vmem:[%s940_s1] sm:$0xff] (!%p162_p10)   ;;  %v573_v1 = vld [vmem:[%s940_s1 + $0x8] sm:$0xff] (!%p162_p10)   ;;  %v763_v2 = vmov (!%p162_p10), 1   ;;  %v764_v3 = vmov (!%p162_p10), 0   ;;  %v765_v10 = vmov (!%p162_p10), 2   ;;  %v766_v11 = vmov (!%p162_p10), 3  }
   0xf   : > { %165 = sbr.rel (%p162_p10) target bundleno = 193 (0xc1), region = 32  ;;  %646 = vset.pattern.permute.xlu1 (!%p162_p10), %v763_v2  ;;  %635 = vset.pattern.permute.xlu0 (!%p162_p10), %v764_v3  ;;  %v567_v4 = vunpack.c.l.bf16 (!%p162_p10), %v566_v0  ;;  %v568_v5 = vunpack.c.h.bf16 (!%p162_p10), %v566_v0  ;;  %v571_v6 = vunpack.c.l.bf16 (!%p162_p10), %v573_v1  ;;  %v572_v7 = vunpack.c.h.bf16 (!%p162_p10), %v573_v1  ;;  %v407_v12 = vld [vmem:[%s941_s2] sm:$0xff] (!%p162_p10)  ;;  %v409_v13 = vld [vmem:[%s941_s2 + $0x10] sm:$0xff] (!%p162_p10)  ;;  %v408_v14 = vld [vmem:[%s941_s2 + $0x8] sm:$0xff] (!%p162_p10)  ;;  %p190_p11 = scmp.lt.s32.totalorder (!%p162_p10), %s753_s15, 1 }
  0x10   : > { %v410_v15 = vld [vmem:[%s941_s2 + $0x18] sm:$0xff] (!%p162_p10)  ;;  %v231_v16 = vlaneseq (!%p162_p10)  ;;  %s186_s26 = sand.u32 (!%p162_p10), 1, %s745_s13   ;;  %s564_s29 = sshll.u32 (!%p162_p10), %s753_s15, 10 }
  0x11   : > { %v647_v8 = vpack.i.bf16 (!%p162_p10), %v568_v5, %v567_v4  ;;  %v652_v9 = vpack.i.bf16 (!%p162_p10), %v572_v7, %v571_v6  ;;  %s555_s27 = sshll.u32 (!%p162_p10), %s186_s26, 6  ;;  %s887_s6 = scalar_lea.hbm (!%p162_p10), %s942_s3, %s564_s29 }
  0x12   : > { %v232_v17 = vshrl.u32 (!%p162_p10), %v231_v16, 7  ;;  %s188_s28 = scalar_lea.vmem (!%p162_p10), [#allocation2], %s555_s27  ;;  %s767_s8 = smov (!%p162_p10), [#allocation2]  }
  0x13   : > { %648 = vperm.xlu1 (!%p162_p10), %646, %v647_v8   ;;  %637 = vperm.xlu0 (!%p162_p10), %635, %v647_v8   ;;  %s471_s30 = sshll.u32 (!%p162_p10), %s188_s28, 4  ;;  %s687_s9 = sshll.u32 (!%p162_p10), %s767_s8, 4  ;;  %s889_s30 = int_to_ptr.vmem [resolvable:$true] %s471_s30  ;;  %s688_s9 = int_to_ptr.vmem [resolvable:$false] %s687_s9 }
  0x14   : > { %v275_v19 = vsub.s32 (!%p162_p10), 1, %v232_v17  ;;  %v279_v21 = vsub.s32 (!%p162_p10), 5, %v232_v17  ;;  %v233_v22 = vsub.s32 (!%p162_p10), 0, %v232_v17  ;;  %v237_v23 = vsub.s32 (!%p162_p10), 4, %v232_v17  ;;  %s683_s7 = scalar_lea.vmem (!%p162_p10), %s889_s30, 1024  ;;  %s689_s10 = scalar_lea.vmem (!%p162_p10), %s688_s9, 2048 }
  0x15   : > { %v325_v24 = vsub.s32 (!%p162_p10), 2, %v232_v17  ;;  %v329_v25 = vsub.s32 (!%p162_p10), 6, %v232_v17  ;;  %v375_v37 = vsub.s32 (!%p162_p10), 3, %v232_v17  ;;  %v379_v38 = vsub.s32 (!%p162_p10), 7, %v232_v17  ;;  %p684_p12 = scmp.ne.s32.totalorder (!%p162_p10), %s889_s30, %s683_s7  ;;  %p690_p1 = scmp.lt.s32.totalorder (!%p162_p10), %s889_s30, %s688_s9 }
  0x16   : > { %s191_s11 = scalar_select %p190_p11, %s753_s15, 1 }
  0x17   : > { %653 = vperm.xlu1 %646, %v652_v9   ;;  %642 = vperm.xlu0 %635, %v652_v9   ;;  %s893_s15 = scalar_lea.sflag [#allocation3], %s186_s26  ;;  %p685_p13 = pnand %p684_p12, %p830_p4 }
  0x18   : > { %s563_s18 = sshll.u32 %s191_s11, 2  ;;  %p691_p2 = scmp.lt.s32.totalorder %s689_s10, %s683_s7 }
  0x19   : > { %s197_s23 = scalar_lea.vmem %s939_s0, %s563_s18  ;;  %p686_p0 = pneg %p685_p13 }
  0x1a   : > { %v200_v18 = vld [vmem:[%s197_s23] sm:$0xf]  ;;  %p692_p3 = por %p691_p2, %p690_p1 }
  0x1b   : > { %663 = vset.pattern.permute.xlu1 %v765_v10  ;;  %657 = vset.pattern.permute.xlu0 %v765_v10  ;;  %v205_v20 = vunpack.c.l.bf16 %v200_v18 }
  0x1c   : > { %665 = vperm.xlu1 %663, %v652_v9   ;;  %659 = vperm.xlu0 %657, %v647_v8   ;;  %p693_p5 = pnand %p692_p3, %p686_p0 }
  0x1d   : > { %v276_v26 = vrot.slane %v205_v20, %v275_v19  ;;  %v280_v27 = vrot.slane %v205_v20, %v279_v21  ;;  %v234_v28 = vrot.slane %v205_v20, %v233_v22  ;;  %v238_v29 = vrot.slane %v205_v20, %v237_v23 }
  0x1e   : > { %v326_v32 = vrot.slane %v205_v20, %v325_v24  ;;  %v330_v33 = vrot.slane %v205_v20, %v329_v25  ;;  %v376_v54 = vrot.slane %v205_v20, %v375_v37  ;;  %v380_v55 = vrot.slane %v205_v20, %v379_v38 }
  0x1f   : > { %v286_v34 = vrot.slane %v276_v26, %v275_v19  ;;  %v290_v36 = vrot.slane %v280_v27, %v275_v19  ;;  %v244_v41 = vrot.slane %v234_v28, %v233_v22  ;;  %v248_v42 = vrot.slane %v238_v29, %v233_v22 }
  0x20   : > { %669 = vset.pattern.permute.xlu1 %v766_v11  ;;  %675 = vset.pattern.permute.xlu0 %v766_v11  ;;  %v868_v46 = vrot.slane %v326_v32, %v325_v24  ;;  %v870_v47 = vrot.slane %v330_v33, %v325_v24 }
  0x21   : > { %671 = vperm.xlu1 %669, %v647_v8   ;;  %677 = vperm.xlu0 %675, %v652_v9   ;;  %v386_v8 = vrot.slane %v376_v54, %v375_v37  ;;  %v390_v9 = vrot.slane %v380_v55, %v375_v37 }
  0x25   : > { %681 = vset.pattern.permute.xlu1 %v764_v3  ;;  %682 = vset.pattern.permute.xlu0 %v764_v3 }
  0x26   : > { %413 = vperm.xlu1 %681, %v407_v12   ;;  %423 = vperm.xlu0 %682, %v409_v13  }
  0x2a   : > { %418 = vperm.xlu1 %681, %v408_v14  }
  0x2e   : > { %428 = vperm.xlu1 %681, %v410_v15  }
  0x92   : > { %v649_v30 = vpop.permute.xlu1 %648  ;;  %v638_v31 = vpop.permute.xlu0 %637 }
  0x93   : > { %v650_v35 = vunpack.i.l.bf16 %v649_v30  ;;  %v651_v39 = vunpack.i.h.bf16 %v649_v30  ;;  %v639_v40 = vunpack.i.l.bf16 %v638_v31  ;;  %v640_v43 = vunpack.i.h.bf16 %v638_v31 }
  0x95   : > { %v291_v52 = vmul.f32 %v650_v35, %v286_v34  ;;  %v292_v53 = vmul.f32 %v650_v35, %v290_v36  ;;  %v293_v56 = vmul.f32 %v651_v39, %v286_v34  ;;  %v294_v57 = vmul.f32 %v651_v39, %v290_v36 }
  0x96   : > { %v654_v44 = vpop.permute.xlu1 %653  ;;  %v643_v45 = vpop.permute.xlu0 %642  ;;  %v249_v58 = vmul.f32 %v639_v40, %v244_v41  ;;  %v250_v59 = vmul.f32 %v639_v40, %v248_v42  ;;  %v251_v60 = vmul.f32 %v640_v43, %v244_v41  ;;  %v252_v61 = vmul.f32 %v640_v43, %v248_v42 }
  0x97   : > { %v656_v48 = vunpack.i.h.bf16 %v654_v44  ;;  %v655_v49 = vunpack.i.l.bf16 %v654_v44  ;;  %v645_v50 = vunpack.i.h.bf16 %v643_v45  ;;  %v644_v51 = vunpack.i.l.bf16 %v643_v45 }
  0x98   : > { %v299_v10 = vadd.f32 %v291_v52, %v249_v58  ;;  %v300_v14 = vadd.f32 %v292_v53, %v250_v59  ;;  %v301_v15 = vadd.f32 %v293_v56, %v251_v60  ;;  %v302_v16 = vadd.f32 %v294_v57, %v252_v61 }
  0x99   : > { %v295_v62 = vmul.f32 %v655_v49, %v286_v34  ;;  %v253_v63 = vmul.f32 %v644_v51, %v244_v41  ;;  %v296_v0 = vmul.f32 %v655_v49, %v290_v36  ;;  %v297_v1 = vmul.f32 %v656_v48, %v286_v34 }
  0x9a   : > { %v254_v2 = vmul.f32 %v644_v51, %v248_v42  ;;  %v255_v3 = vmul.f32 %v645_v50, %v244_v41  ;;  %v298_v6 = vmul.f32 %v656_v48, %v290_v36  ;;  %v256_v7 = vmul.f32 %v645_v50, %v248_v42 }
  0x9b   : > { %v666_v4 = vpop.permute.xlu1 %665  ;;  %v660_v5 = vpop.permute.xlu0 %659  ;;  %v303_v17 = vadd.f32 %v295_v62, %v253_v63 }
  0x9c   : > { %v667_v11 = vunpack.i.l.bf16 %v666_v4  ;;  %v662_v12 = vunpack.i.h.bf16 %v660_v5  ;;  %v661_v13 = vunpack.i.l.bf16 %v660_v5  ;;  %v304_v18 = vadd.f32 %v296_v0, %v254_v2 }
  0x9d   : > { %v305_v19 = vadd.f32 %v297_v1, %v255_v3  ;;  %v306_v22 = vadd.f32 %v298_v6, %v256_v7  ;;  %v668_v23 = vunpack.i.h.bf16 %v666_v4 }
  0x9e   : > { %v345_v20 = vmul.f32 %v667_v11, %v868_v46  ;;  %v346_v21 = vmul.f32 %v667_v11, %v870_v47  ;;  %v341_v24 = vmul.f32 %v661_v13, %v868_v46  ;;  %v342_v25 = vmul.f32 %v661_v13, %v870_v47 }
  0x9f   : > { %v343_v28 = vmul.f32 %v662_v12, %v868_v46  ;;  %v344_v32 = vmul.f32 %v662_v12, %v870_v47  ;;  %v347_v44 = vmul.f32 %v668_v23, %v868_v46  ;;  %v348_v45 = vmul.f32 %v668_v23, %v870_v47 }
  0xa0   : > { %v672_v26 = vpop.permute.xlu1 %671  ;;  %v678_v27 = vpop.permute.xlu0 %677  ;;  %v349_v34 = vadd.f32 %v341_v24, %v299_v10  ;;  %v350_v35 = vadd.f32 %v342_v25, %v300_v14  ;;  %v353_v38 = vadd.f32 %v345_v20, %v303_v17  ;;  %v354_v39 = vadd.f32 %v346_v21, %v304_v18 }
  0xa1   : > { %v674_v29 = vunpack.i.h.bf16 %v672_v26  ;;  %v673_v30 = vunpack.i.l.bf16 %v672_v26  ;;  %v679_v31 = vunpack.i.l.bf16 %v678_v27  ;;  %v680_v33 = vunpack.i.h.bf16 %v678_v27 }
  0xa2   : > { %v351_v54 = vadd.f32 %v343_v28, %v301_v15  ;;  %v352_v55 = vadd.f32 %v344_v32, %v302_v16  ;;  %v355_v1 = vadd.f32 %v347_v44, %v305_v19  ;;  %v356_v2 = vadd.f32 %v348_v45, %v306_v22 }
  0xa3   : > { %v391_v36 = vmul.f32 %v673_v30, %v386_v8  ;;  %v392_v37 = vmul.f32 %v673_v30, %v390_v9  ;;  %v393_v40 = vmul.f32 %v674_v29, %v386_v8  ;;  %v394_v41 = vmul.f32 %v674_v29, %v390_v9 }
  0xa4   : > { %v395_v42 = vmul.f32 %v679_v31, %v386_v8  ;;  %v396_v43 = vmul.f32 %v679_v31, %v390_v9  ;;  %v397_v56 = vmul.f32 %v680_v33, %v386_v8  ;;  %v398_v57 = vmul.f32 %v680_v33, %v390_v9 }
  0xa5   : > { %v414_v48 = vpop.permute.xlu1 %413  ;;  %v399_v49 = vadd.f32 %v391_v36, %v349_v34  ;;  %v400_v50 = vadd.f32 %v392_v37, %v350_v35  ;;  %v424_v51 = vpop.permute.xlu0 %423  ;;  %v401_v62 = vadd.f32 %v393_v40, %v351_v54  ;;  %v402_v46 = vadd.f32 %v394_v41, %v352_v55 }
  0xa6   : > { %v403_v52 = vadd.f32 %v395_v42, %v353_v38  ;;  %v404_v53 = vadd.f32 %v396_v43, %v354_v39  ;;  %v405_v9 = vadd.f32 %v397_v56, %v355_v1  ;;  %v406_v10 = vadd.f32 %v398_v57, %v356_v2 }
  0xa7   : > { %v431_v58 = vadd.f32 %v414_v48, %v399_v49  ;;  %v432_v59 = vadd.f32 %v414_v48, %v400_v50 }
  0xa8   : > { %v435_v60 = vadd.f32 %v424_v51, %v403_v52  ;;  %v436_v61 = vadd.f32 %v424_v51, %v404_v53 }
  0xa9   : > { %v439_v63 = vmax.f32 %v431_v58, 0.0  ;;  %v440_v47 = vmax.f32 %v432_v59, 0.0  ;;  %v419_v0 = vpop.permute.xlu1 %418 }
  0xaa   : > { %v443_v3 = vmax.f32 %v435_v60, 0.0  ;;  %v444_v4 = vmax.f32 %v436_v61, 0.0  ;;  %v433_v5 = vadd.f32 %v419_v0, %v401_v62  ;;  %v434_v6 = vadd.f32 %v419_v0, %v402_v46 }
  0xab   : > { %447 = vst [vmem:[%s188_s28] sm:$0xff] %v439_v63  ;;  %448 = vst [vmem:[%s188_s28 + $0x8] sm:$0xff] %v440_v47 }
  0xac   : > { %451 = vst [vmem:[%s188_s28 + $0x20] sm:$0xff] %v443_v3  ;;  %452 = vst [vmem:[%s188_s28 + $0x28] sm:$0xff] %v444_v4  ;;  %v441_v7 = vmax.f32 %v433_v5, 0.0  ;;  %v442_v8 = vmax.f32 %v434_v6, 0.0 }
  0xad   : > { %v429_v11 = vpop.permute.xlu1 %428 }
  0xae   : > { %449 = vst [vmem:[%s188_s28 + $0x10] sm:$0xff] %v441_v7  ;;  %450 = vst [vmem:[%s188_s28 + $0x18] sm:$0xff] %v442_v8  ;;  %v437_v12 = vadd.f32 %v429_v11, %v405_v9  ;;  %v438_v13 = vadd.f32 %v429_v11, %v406_v10 }
  0xb0   : > { %v445_v14 = vmax.f32 %v437_v12, 0.0  ;;  %v446_v15 = vmax.f32 %v438_v13, 0.0 }
  0xb2   : > { %453 = vst [vmem:[%s188_s28 + $0x30] sm:$0xff] %v445_v14  ;;  %454 = vst [vmem:[%s188_s28 + $0x38] sm:$0xff] %v446_v15 }
  0xb3   : > { %696 = shalt.err (!%p693_p5)
}
  0xb4   : > { %s697_s11 = scalar_lea.hbm %s887_s6, 1024  ;;  %s701_s21 = scalar_lea.hbm %s942_s3, 2048 }
  0xb5   : > { %p698_p6 = scmp.ne.s32.totalorder %s887_s6, %s697_s11  ;;  %p702_p10 = scmp.lt.u32.totalorder %s887_s6, %s942_s3 }
  0xb6   : > { %p703_p11 = scmp.lt.u32.totalorder %s701_s21, %s697_s11  ;;  %p705_p13 = scmp.lt.u32.totalorder %s697_s11, %s887_s6 }
  0xb7   : > { %p699_p7 = pnand %p698_p6, %p830_p4 }
  0xb8   : > { %p704_p12 = por %p703_p11, %p702_p10 }
  0xb9   : > { %p700_p9 = pneg %p699_p7 }
  0xba   : > { %p706_p0 = por %p705_p13, %p704_p12 }
  0xbc   : > { %p707_p1 = pnand %p706_p0, %p700_p9 }
  0xbe   : > { %710 = shalt.err (!%p707_p1)
}
  0xbf   : > { %s768_s27 = smov 256   ;;  %s769_s28 = smov 16  }
  0xc0   : > { %574 = dma.vmem_to_hbm [thread:$0]  (%p830_p4), %s889_s30, 1024, %s887_s6, %s893_s15, %s768_s27, %s768_s27, %s769_s28  }
  0xc1 PF: > { %p580_p2 = scmp.ge.s32.totalorder %s761_s17, 2  ;;  %s486_s29 = sand.u32 1, %s741_s12  }
  0xc2   : > { %s487_s4 = scalar_lea.sflag [#allocation3], %s486_s29 }
  0xc3   : > { %p577_p3 = pnand %p580_p2, %p837_p8 }
  0xc5   : > { %736 = dma.done.wait (!%p577_p3), %s487_s4, 1024  }
  0xc6   : > { %738 = vsyncadd (!%p577_p3), %s487_s4, 4294966272  ;;  %s16_s17 = sadd.s32 1, %s761_s17   ;;  %s945_s12 = smov %s745_s13 }
  0xc7   : > { %p13_p5 = scmp.ge.s32.totalorder %s16_s17, 4   ;;  %s946_s13 = smov %s749_s14 }
  0xc8   : > { %s947_s14 = smov %s843_s25  ;;  %s948_s15 = smov %s757_s16 }
  0xc9   : > { %s949_s16 = smov %s951_s20  ;;  %15 = sbr.rel (!%p13_p5) target bundleno = 4 (0x4), region = 67 }
  0xd0   :  { %492 = vsyncpa [#allocation3], 1 }
  0xd1   :  { %494 = vsyncpa [#allocation3 + $0x1], 1 }

</bundles_post_ra>
